<compile_context>
chip_gen: v7x
topology: tpu7x:2x2x1
jax: 0.10.0
libtpu: 0.0.40
codegen_flags: <defaults>
</compile_context>

<pallas_src>
import functools
import math

import jax
import jax.numpy as jnp
import numpy as np
from jax import lax
from jax.experimental import pallas as pl
from jax.experimental.pallas import tpu as pltpu

ERR_EVERY = 4  # sweeps between convergence checks


def _round_up(n, m):
    return ((n + m - 1) // m) * m


def _sinkhorn_kernel(x_ref, yt_ref, cost_ref, p_ref, c_ref, *,
                     eps, max_iter, p_norm, n_valid, m_valid, err_every):
    """One batch element per grid step.

    x_ref:  (1, N_pad, D)   f32   source points (rows >= n_valid are zero pad)
    yt_ref: (1, D, M_pad)   f32   target points, pre-transposed (cols >= m_valid pad)
    cost_ref: (1, 1, 1), p_ref/c_ref: (1, N_pad, M_pad)
    """
    x = x_ref[0]                  # (N_pad, D)
    yt = yt_ref[0]                # (D, M_pad)
    N_pad, D = x.shape
    M_pad = yt.shape[1]

    # ---- cost matrix C[i,j] = sum_d |x[i,d] - y[j,d]|^p -------------------
    if p_norm == 2 and D >= 16:
        # MXU path for non-trivial D. Note: x.x + y.y - 2 x.y can lose
        # precision for near-duplicate points (clamped at 0); exact VPU path
        # is used for small D.
        x2 = jnp.sum(x * x, axis=1, keepdims=True)           # (N_pad, 1)
        y2 = jnp.sum(yt * yt, axis=0, keepdims=True)          # (1, M_pad)
        xy = jnp.dot(x, yt, preferred_element_type=jnp.float32)
        C = jnp.maximum(x2 + y2 - 2.0 * xy, 0.0)
    else:
        # tiny D (e.g. 3): y side is a cheap sublane broadcast of a lane-dense
        # row (yt pre-transposed in the wrapper); no abs needed for p == 2.
        C = jnp.zeros((N_pad, M_pad), jnp.float32)
        for d in range(D):
            diff = x[:, d:d + 1] - yt[d:d + 1, :]              # (N_pad, M_pad)
            if p_norm == 2:
                C = C + diff * diff
            elif p_norm == 1:
                C = C + jnp.abs(diff)
            else:
                C = C + jnp.abs(diff) ** p_norm

    # Store C now -> only neg_C_eps stays live across the Sinkhorn loop
    # (drops one persistent (N,M) f32 buffer from the working set).
    c_ref[0] = C

    feps = jnp.float32(eps)
    inv_eps = jnp.float32(1.0 / eps)
    thresh = jnp.float32(1e-9)
    neg_big = jnp.float32(-1e30)
    mu_log = jnp.float32(math.log(1.0 / n_valid + 1e-8))   # log(1/N + 1e-8)
    nu_log = jnp.float32(math.log(1.0 / m_valid + 1e-8))   # log(1/M + 1e-8)

    neg_C_eps = C * (-inv_eps)                               # (N_pad, M_pad)

    # Validity masks for lane/sublane padding; padded u/v are pinned to -1e30
    # so exp() underflows to exactly 0 and padding never leaks into logsumexp.
    row_valid = lax.broadcasted_iota(jnp.int32, (N_pad, 1), 0) < n_valid
    col_valid = lax.broadcasted_iota(jnp.int32, (1, M_pad), 1) < m_valid

    # Push the sum-of-exp onto the (otherwise idle) MXU at real sizes; the
    # max stays on the XLU. No benefit at toy sizes, so gate on shape.
    use_mxu_reduce = (N_pad >= 128) and (M_pad >= 128)
    if use_mxu_reduce:
        ones_m = jnp.ones((M_pad, 1), jnp.float32)   # hoisted out of the loop
        ones_n = jnp.ones((1, N_pad), jnp.float32)

    def lse_rows(m):                          # (N_pad, M_pad) -> (N_pad, 1)
        mx = jnp.max(m, axis=1, keepdims=True)
        e = jnp.exp(m - mx)
        if use_mxu_reduce:
            s = jnp.dot(e, ones_m, preferred_element_type=jnp.float32)
        else:
            s = jnp.sum(e, axis=1, keepdims=True)
        return mx + jnp.log(s)

    def lse_cols(m):                          # (N_pad, M_pad) -> (1, M_pad)
        mx = jnp.max(m, axis=0, keepdims=True)
        e = jnp.exp(m - mx)
        if use_mxu_reduce:
            s = jnp.dot(ones_n, e, preferred_element_type=jnp.float32)
        else:
            s = jnp.sum(e, axis=0, keepdims=True)
        return mx + jnp.log(s)

    # PyTorch breaks when err < thresh; here the same condition drives a
    # lax.while_loop (true early exit). err is per batch element and is only
    # recomputed every `err_every` sweeps (lax.cond) to keep the scalar
    # cross-lane reduce off the per-iteration critical path.
    def cond(carry):
        it, _, _, err = carry
        return jnp.logical_and(it < max_iter, err >= thresh)

    def body(carry):
        it, u_eps, v_eps, err = carry
        u_new = (mu_log - lse_rows(neg_C_eps + u_eps + v_eps)) + u_eps
        u_new = jnp.where(row_valid, u_new, neg_big)
        v_new = (nu_log - lse_cols(neg_C_eps + u_new + v_eps)) + v_eps
        v_new = jnp.where(col_valid, v_new, neg_big)
        check = (it % err_every) == (err_every - 1)
        # torch: err = (u - u_init).abs().sum(-1).mean(); with u = eps*u_eps
        # and one batch element per block, mean over B is the element itself.
        err_new = lax.cond(
            check,
            lambda op: feps * jnp.sum(jnp.abs(op[0] - op[1])),
            lambda op: op[2],
            (u_new, u_eps, err))
        return (it + 1, u_new, v_new, err_new)

    u0 = jnp.where(row_valid, jnp.zeros((N_pad, 1), jnp.float32), neg_big)
    v0 = jnp.where(col_valid, jnp.zeros((1, M_pad), jnp.float32), neg_big)
    init = (jnp.int32(0), u0, v0, jnp.float32(jnp.inf))
    _, u_eps, v_eps, _ = lax.while_loop(cond, body, init)

    # transport plan and cost (padded entries of P are exactly 0)
    P = jnp.exp(neg_C_eps + u_eps + v_eps)                   # (N_pad, M_pad)
    p_ref[0] = P
    # Re-read C from its output block: exact sum(P*C) like torch, without
    # keeping a second (N,M) buffer live through the loop.
    cost_ref[0] = jnp.sum(P * c_ref[0], axis=(0, 1), keepdims=True)


def log_sinkhorn_distance_loss(x, y, *, eps, max_iter,
                               batch_reduction='none', type_of_cost_norm='L2'):
    """JAX/Pallas equivalent of log_Sinkhorn_Distance_Loss.forward(x, y, device)."""
    # TODO(synk): 2-D (unbatched) torch input path (x.dim()==2) is not implemented.
    p_norm = int(type_of_cost_norm[-1])
    x = jnp.asarray(x, jnp.float32)
    y = jnp.asarray(y, jnp.float32)
    B, N, D = x.shape
    M = y.shape[1]

    # Lane/sublane alignment: N -> multiple of 8 (sublanes), M -> multiple of
    # 128 (lanes). Lane-dense (N_pad, M_pad) shapes give full VPU/EUP/XLU lane
    # utilization and unmasked stores for P/C.
    N_pad = max(_round_up(N, 8), 8)
    M_pad = max(_round_up(M, 128), 128)

    x_p = x if N_pad == N else jnp.pad(x, ((0, 0), (0, N_pad - N), (0, 0)))
    yt = jnp.swapaxes(y, 1, 2)                                  # (B, D, M)
    yt_p = yt if M_pad == M else jnp.pad(yt, ((0, 0), (0, 0), (0, M_pad - M)))

    kernel = functools.partial(
        _sinkhorn_kernel, eps=float(eps), max_iter=int(max_iter),
        p_norm=p_norm, n_valid=N, m_valid=M, err_every=ERR_EVERY)

    # Per-block (per-TensorCore) VMEM footprint: double-buffered I/O blocks
    # plus the loop-resident (N_pad, M_pad) buffers. Derived against v7x's
    # 64 MiB physical per-TC VMEM (not the 128 MiB of v5e/v6e); if a per-batch
    # block ever exceeds this, N/M must additionally be tiled.
    # TODO(synk): multi-pass (tiled N/M) logsumexp for blocks that exceed VMEM.
    nm = N_pad * M_pad
    io_bytes = 4 * (N_pad * D + D * M_pad + 2 * nm + 8)
    resident_bytes = 4 * (4 * nm + 16 * (N_pad + M_pad))
    vmem_limit = int(min(max(2 * io_bytes + resident_bytes + (4 << 20),
                             32 << 20), 64 << 20))

    grid_spec = pltpu.PrefetchScalarGridSpec(
        num_scalar_prefetch=0,
        grid=(B,),                                   # batch is embarrassingly parallel
        in_specs=[
            pl.BlockSpec((1, N_pad, D), lambda b: (b, 0, 0)),
            pl.BlockSpec((1, D, M_pad), lambda b: (b, 0, 0)),
        ],
        out_specs=(
            pl.BlockSpec((1, 1, 1), lambda b: (b, 0, 0)),
            pl.BlockSpec((1, N_pad, M_pad), lambda b: (b, 0, 0)),
            pl.BlockSpec((1, N_pad, M_pad), lambda b: (b, 0, 0)),
        ),
    )

    cost3, P_pad, C_pad = pl.pallas_call(
        kernel,
        grid_spec=grid_spec,
        out_shape=(
            jax.ShapeDtypeStruct((B, 1, 1), jnp.float32),
            jax.ShapeDtypeStruct((B, N_pad, M_pad), jnp.float32),
            jax.ShapeDtypeStruct((B, N_pad, M_pad), jnp.float32),
        ),
        compiler_params=pltpu.CompilerParams(
            dimension_semantics=("parallel",),       # 2 TCs on v7x; harmless elsewhere
            vmem_limit_bytes=vmem_limit),
    )(x_p, yt_p)

    cost = cost3[:, 0, 0]                            # (B,)
    P = P_pad[:, :N, :M]
    C = C_pad[:, :N, :M]

    if batch_reduction == 'mean':
        cost = cost.mean()
    elif batch_reduction == 'sum':
        cost = cost.sum()
    # 'none' -> per-batch cost
    return cost, P, C


def _reference(x, y, *, eps, max_iter, p_norm=2, thresh=1e-9):
    """Pure-JAX mirror of the PyTorch forward (host-side break like err.item())."""
    x = x.astype(jnp.float32)
    y = y.astype(jnp.float32)
    C = jnp.sum(jnp.abs(x[:, :, None, :] - y[:, None, :, :]) ** p_norm, axis=-1)
    B, N = x.shape[:2]
    Mp = y.shape[1]
    mu_log = math.log(1.0 / N + 1e-8)
    nu_log = math.log(1.0 / Mp + 1e-8)
    u = jnp.zeros((B, N), jnp.float32)
    v = jnp.zeros((B, Mp), jnp.float32)

    def M(u, v):
        return (-C + u[:, :, None] + v[:, None, :]) / eps

    for _ in range(max_iter):
        u_init = u
        u = eps * (mu_log - jax.nn.logsumexp(M(u, v), axis=-1)) + u
        v = eps * (nu_log - jax.nn.logsumexp(jnp.swapaxes(M(u, v), -2, -1), axis=-1)) + v
        err = jnp.mean(jnp.sum(jnp.abs(u - u_init), axis=-1))
        if float(err) < thresh:
            break
    P = jnp.exp(M(u, v))
    cost = jnp.sum(P * C, axis=(-2, -1))
    return cost, P, C


if __name__ == "__main__":
    key = jax.random.PRNGKey(0)
    kx, ky = jax.random.split(key)

    # Case 1: toy shapes from the module (B, N, M, D) = (2, 8, 8, 3).
    B, N, M, D = 2, 8, 8, 3
    x = jax.random.normal(kx, (B, N, D), dtype=jnp.float32)
    y = jax.random.normal(ky, (B, M, D), dtype=jnp.float32)

    cost, P, C = log_sinkhorn_distance_loss(
        x, y, eps=0.1, max_iter=100,
        batch_reduction='none', type_of_cost_norm='L2')
    jax.block_until_ready((cost, P, C))

    assert cost.shape == (B,)
    assert P.shape == (B, N, M)
    assert C.shape == (B, N, M)
    assert bool(jnp.all(jnp.isfinite(cost)))
    assert bool(jnp.all(jnp.isfinite(P)))

    cost_r, P_r, C_r = _reference(x, y, eps=0.1, max_iter=100)
    np.testing.assert_allclose(np.asarray(C), np.asarray(C_r), rtol=1e-5, atol=1e-5)
    np.testing.assert_allclose(np.asarray(P), np.asarray(P_r), rtol=1e-2, atol=1e-5)
    np.testing.assert_allclose(np.asarray(cost), np.asarray(cost_r), rtol=1e-2, atol=1e-5)

    # Case 2: ragged shapes (N=7, M=5) exercising the lane/sublane padding masks.
    kx2, ky2 = jax.random.split(ky)
    B2, N2, M2 = 2, 7, 5
    x2 = jax.random.normal(kx2, (B2, N2, D), dtype=jnp.float32)
    y2 = jax.random.normal(ky2, (B2, M2, D), dtype=jnp.float32)
    cost2, P2, C2 = log_sinkhorn_distance_loss(
        x2, y2, eps=0.1, max_iter=100,
        batch_reduction='none', type_of_cost_norm='L2')
    jax.block_until_ready((cost2, P2, C2))

    cost2_r, P2_r, C2_r = _reference(x2, y2, eps=0.1, max_iter=100)
    np.testing.assert_allclose(np.asarray(C2), np.asarray(C2_r), rtol=1e-5, atol=1e-5)
    np.testing.assert_allclose(np.asarray(P2), np.asarray(P2_r), rtol=1e-2, atol=1e-5)
    np.testing.assert_allclose(np.asarray(cost2), np.asarray(cost2_r), rtol=1e-2, atol=1e-5)

    print("KERNEL_OK")
</pallas_src>

<mosaic_0001>
module attributes {stable_mosaic.version = 11 : i64} {
  func.func @_sinkhorn_kernel(%arg0: i32, %arg1: memref<1x8x3xf32, #tpu.memory_space<vmem>>, %arg2: memref<1x3x128xf32, #tpu.memory_space<vmem>>, %arg3: memref<1x1x1xf32, #tpu.memory_space<vmem>>, %arg4: memref<1x8x128xf32, #tpu.memory_space<vmem>>, %arg5: memref<1x8x128xf32, #tpu.memory_space<vmem>>) attributes {dimension_semantics = [#tpu.dimension_semantics<parallel>], iteration_bounds = array<i64: 2>, scalar_prefetch = 0 : i64, scratch_operands = 0 : i64, tpu.core_type = #tpu.core_type<tc>, window_params = [{transform_indices = @transform_0, window_bounds = array<i64: 1, 8, 3>}, {transform_indices = @transform_1, window_bounds = array<i64: 1, 3, 128>}, {transform_indices = @transform_2, window_bounds = array<i64: 1, 1, 1>}, {transform_indices = @transform_3, window_bounds = array<i64: 1, 8, 128>}, {transform_indices = @transform_4, window_bounds = array<i64: 1, 8, 128>}]} {
    %c0 = arith.constant 0 : index
    %c0_0 = arith.constant 0 : index
    %c0_1 = arith.constant 0 : index
    %0 = vector.load %arg1[%c0, %c0_0, %c0_1] : memref<1x8x3xf32, #tpu.memory_space<vmem>>, vector<1x8x3xf32>
    %1 = vector.shape_cast %0 : vector<1x8x3xf32> to vector<8x3xf32>
    %c0_2 = arith.constant 0 : index
    %c0_3 = arith.constant 0 : index
    %c0_4 = arith.constant 0 : index
    %2 = vector.load %arg2[%c0_2, %c0_3, %c0_4] : memref<1x3x128xf32, #tpu.memory_space<vmem>>, vector<1x3x128xf32>
    %3 = vector.shape_cast %2 : vector<1x3x128xf32> to vector<3x128xf32>
    %cst = arith.constant 0.000000e+00 : f32
    %4 = vector.broadcast %cst : f32 to vector<8x128xf32>
    %5 = vector.extract_strided_slice %1 {offsets = [0, 0], sizes = [8, 1], strides = [1, 1]} : vector<8x3xf32> to vector<8x1xf32>
    %6 = vector.extract_strided_slice %3 {offsets = [0, 0], sizes = [1, 128], strides = [1, 1]} : vector<3x128xf32> to vector<1x128xf32>
    %7 = vector.broadcast %5 : vector<8x1xf32> to vector<8x128xf32>
    %8 = vector.broadcast %6 : vector<1x128xf32> to vector<8x128xf32>
    %9 = arith.subf %7, %8 : vector<8x128xf32>
    %10 = arith.mulf %9, %9 : vector<8x128xf32>
    %11 = arith.addf %4, %10 : vector<8x128xf32>
    %12 = vector.extract_strided_slice %1 {offsets = [0, 1], sizes = [8, 1], strides = [1, 1]} : vector<8x3xf32> to vector<8x1xf32>
    %13 = vector.extract_strided_slice %3 {offsets = [1, 0], sizes = [1, 128], strides = [1, 1]} : vector<3x128xf32> to vector<1x128xf32>
    %14 = vector.broadcast %12 : vector<8x1xf32> to vector<8x128xf32>
    %15 = vector.broadcast %13 : vector<1x128xf32> to vector<8x128xf32>
    %16 = arith.subf %14, %15 : vector<8x128xf32>
    %17 = arith.mulf %16, %16 : vector<8x128xf32>
    %18 = arith.addf %11, %17 : vector<8x128xf32>
    %19 = vector.extract_strided_slice %1 {offsets = [0, 2], sizes = [8, 1], strides = [1, 1]} : vector<8x3xf32> to vector<8x1xf32>
    %20 = vector.extract_strided_slice %3 {offsets = [2, 0], sizes = [1, 128], strides = [1, 1]} : vector<3x128xf32> to vector<1x128xf32>
    %21 = vector.broadcast %19 : vector<8x1xf32> to vector<8x128xf32>
    %22 = vector.broadcast %20 : vector<1x128xf32> to vector<8x128xf32>
    %23 = arith.subf %21, %22 : vector<8x128xf32>
    %24 = arith.mulf %23, %23 : vector<8x128xf32>
    %25 = arith.addf %18, %24 : vector<8x128xf32>
    %c0_5 = arith.constant 0 : index
    %c0_6 = arith.constant 0 : index
    %c0_7 = arith.constant 0 : index
    %26 = vector.load %arg5[%c0_5, %c0_6, %c0_7] : memref<1x8x128xf32, #tpu.memory_space<vmem>>, vector<1x8x128xf32>
    %27 = vector.shape_cast %26 : vector<1x8x128xf32> to vector<8x128xf32>
    %28 = vector.shape_cast %25 : vector<8x128xf32> to vector<1x8x128xf32>
    tpu.vector_store %arg5[%c0_5, %c0_6, %c0_7], %28 {strides = array<i32>} : memref<1x8x128xf32, #tpu.memory_space<vmem>>, vector<1x8x128xf32>,
    %cst_8 = arith.constant 0.000000e+00 : f32
    %cst_9 = arith.constant 1.000000e+01 : f32
    %29 = arith.subf %cst_8, %cst_9 : f32
    %30 = vector.broadcast %29 : f32 to vector<8x128xf32>
    %31 = arith.mulf %25, %30 : vector<8x128xf32>
    %32 = tpu.iota {dimensions = array<i32: 0>} : vector<8x1xi32>
    %c8_i32 = arith.constant 8 : i32
    %33 = vector.broadcast %c8_i32 : i32 to vector<8x1xi32>
    %34 = arith.cmpi slt, %32, %33 : vector<8x1xi32>
    %35 = tpu.iota {dimensions = array<i32: 1>} : vector<1x128xi32>
    %c8_i32_10 = arith.constant 8 : i32
    %36 = vector.broadcast %c8_i32_10 : i32 to vector<1x128xi32>
    %37 = arith.cmpi slt, %35, %36 : vector<1x128xi32>
    %cst_11 = arith.constant 0.000000e+00 : f32
    %38 = vector.broadcast %cst_11 : f32 to vector<8x1xf32>
    %cst_12 = arith.constant -1.000000e+30 : f32
    %39 = vector.broadcast %cst_12 : f32 to vector<8x1xf32>
    %40 = arith.select %34, %38, %39 : vector<8x1xi1>, vector<8x1xf32>
    %cst_13 = arith.constant 0.000000e+00 : f32
    %41 = vector.broadcast %cst_13 : f32 to vector<1x128xf32>
    %cst_14 = arith.constant -1.000000e+30 : f32
    %42 = vector.broadcast %cst_14 : f32 to vector<1x128xf32>
    %43 = arith.select %37, %41, %42 : vector<1x128xi1>, vector<1x128xf32>
    %cst_15 = arith.constant 9.99999971E-10 : f32
    %cst_16 = arith.constant -2.07944155 : f32
    %cst_17 = arith.constant -1.000000e+30 : f32
    %cst_18 = arith.constant -2.07944155 : f32
    %cst_19 = arith.constant 1.000000e-01 : f32
    %c0_i32 = arith.constant 0 : i32
    %cst_20 = arith.constant 0x7F800000 : f32
    %44:4 = scf.while (%arg6 = %c0_i32, %arg7 = %40, %arg8 = %43, %arg9 = %cst_20) : (i32, vector<8x1xf32>, vector<1x128xf32>, f32) -> (i32, vector<8x1xf32>, vector<1x128xf32>, f32) {
      %c100_i32 = arith.constant 100 : i32
      %64 = arith.cmpi slt, %arg6, %c100_i32 : i32
      %65 = arith.cmpf oge, %arg9, %cst_15 : f32
      %66 = arith.andi %64, %65 : i1
      scf.condition(%66) %arg6, %arg7, %arg8, %arg9 : i32, vector<8x1xf32>, vector<1x128xf32>, f32
    } do {
    ^bb0(%arg6: i32, %arg7: vector<8x1xf32>, %arg8: vector<1x128xf32>, %arg9: f32):
      %64 = vector.broadcast %arg7 : vector<8x1xf32> to vector<8x128xf32>
      %65 = arith.addf %31, %64 : vector<8x128xf32>
      %66 = vector.broadcast %arg8 : vector<1x128xf32> to vector<8x128xf32>
      %67 = arith.addf %65, %66 : vector<8x128xf32>
      %cst_31 = arith.constant dense<0xFF800000> : vector<8xf32>
      %68 = vector.multi_reduction <maximumf>, %67, %cst_31 [1] : vector<8x128xf32> to vector<8xf32>
      %69 = vector.shape_cast %68 : vector<8xf32> to vector<8x1xf32>
      %70 = vector.broadcast %69 : vector<8x1xf32> to vector<8x128xf32>
      %71 = arith.subf %67, %70 : vector<8x128xf32>
      %72 = math.exp %71 : vector<8x128xf32>
      %cst_32 = arith.constant dense<0.000000e+00> : vector<8xf32>
      %73 = vector.multi_reduction <add>, %72, %cst_32 [1] : vector<8x128xf32> to vector<8xf32>
      %74 = vector.shape_cast %73 : vector<8xf32> to vector<8x1xf32>
      %75 = math.log %74 : vector<8x1xf32>
      %76 = arith.addf %69, %75 : vector<8x1xf32>
      %77 = vector.broadcast %cst_16 : f32 to vector<8x1xf32>
      %78 = arith.subf %77, %76 : vector<8x1xf32>
      %79 = arith.addf %78, %arg7 : vector<8x1xf32>
      %80 = vector.broadcast %cst_17 : f32 to vector<8x1xf32>
      %81 = arith.select %34, %79, %80 : vector<8x1xi1>, vector<8x1xf32>
      %82 = vector.broadcast %81 : vector<8x1xf32> to vector<8x128xf32>
      %83 = arith.addf %31, %82 : vector<8x128xf32>
      %84 = vector.broadcast %arg8 : vector<1x128xf32> to vector<8x128xf32>
      %85 = arith.addf %83, %84 : vector<8x128xf32>
      %cst_33 = arith.constant dense<0xFF800000> : vector<128xf32>
      %86 = vector.multi_reduction <maximumf>, %85, %cst_33 [0] : vector<8x128xf32> to vector<128xf32>
      %87 = vector.shape_cast %86 : vector<128xf32> to vector<1x128xf32>
      %88 = vector.broadcast %87 : vector<1x128xf32> to vector<8x128xf32>
      %89 = arith.subf %85, %88 : vector<8x128xf32>
      %90 = math.exp %89 : vector<8x128xf32>
      %cst_34 = arith.constant dense<0.000000e+00> : vector<128xf32>
      %91 = vector.multi_reduction <add>, %90, %cst_34 [0] : vector<8x128xf32> to vector<128xf32>
      %92 = vector.shape_cast %91 : vector<128xf32> to vector<1x128xf32>
      %93 = math.log %92 : vector<1x128xf32>
      %94 = arith.addf %87, %93 : vector<1x128xf32>
      %95 = vector.broadcast %cst_18 : f32 to vector<1x128xf32>
      %96 = arith.subf %95, %94 : vector<1x128xf32>
      %97 = arith.addf %96, %arg8 : vector<1x128xf32>
      %98 = vector.broadcast %cst_17 : f32 to vector<1x128xf32>
      %99 = arith.select %37, %97, %98 : vector<1x128xi1>, vector<1x128xf32>
      %c4_i32 = arith.constant 4 : i32
      %c0_i32_35 = arith.constant 0 : i32
      %100 = arith.cmpi eq, %c4_i32, %c0_i32_35 : i32
      %c1_i32 = arith.constant 1 : i32
      %101 = arith.select %100, %c1_i32, %c4_i32 : i32
      %102 = arith.remsi %arg6, %101 : i32
      %c0_i32_36 = arith.constant 0 : i32
      %103 = arith.cmpi ne, %102, %c0_i32_36 : i32
      %c0_i32_37 = arith.constant 0 : i32
      %104 = arith.cmpi slt, %102, %c0_i32_37 : i32
      %c0_i32_38 = arith.constant 0 : i32
      %105 = arith.cmpi slt, %101, %c0_i32_38 : i32
      %106 = arith.xori %104, %105 : i1
      %107 = arith.andi %106, %103 : i1
      %108 = arith.addi %102, %101 : i32
      %109 = arith.select %107, %108, %102 : i32
      %c3_i32 = arith.constant 3 : i32
      %110 = arith.cmpi eq, %109, %c3_i32 : i32
      %111 = arith.extui %110 : i1 to i32
      %c0_i32_39 = arith.constant 0 : i32
      %112 = arith.cmpi ne, %111, %c0_i32_39 : i32
      %113 = scf.if %112 -> (f32) {
        %115 = arith.subf %81, %arg7 : vector<8x1xf32>
        %116 = math.absf %115 : vector<8x1xf32>
        %117 = vector.shape_cast %116 : vector<8x1xf32> to vector<1x8x1xf32>
        %cst_41 = arith.constant dense<0.000000e+00> : vector<1xf32>
        %118 = vector.multi_reduction <add>, %117, %cst_41 [1, 2] : vector<1x8x1xf32> to vector<1xf32>
        %119 = vector.shape_cast %118 : vector<1xf32> to vector<1x1x1xf32>
        %120 = vector.extract %119[0, 0, 0] : f32 from vector<1x1x1xf32>
        %121 = arith.mulf %cst_19, %120 : f32
        scf.yield %121 : f32
      } else {
        scf.yield %arg9 : f32
      }
      %c1_i32_40 = arith.constant 1 : i32
      %114 = arith.addi %arg6, %c1_i32_40 : i32
      scf.yield %114, %81, %99, %113 : i32, vector<8x1xf32>, vector<1x128xf32>, f32
    }
    %45 = vector.broadcast %44#1 : vector<8x1xf32> to vector<8x128xf32>
    %46 = arith.addf %31, %45 : vector<8x128xf32>
    %47 = vector.broadcast %44#2 : vector<1x128xf32> to vector<8x128xf32>
    %48 = arith.addf %46, %47 : vector<8x128xf32>
    %49 = math.exp %48 : vector<8x128xf32>
    %c0_21 = arith.constant 0 : index
    %c0_22 = arith.constant 0 : index
    %c0_23 = arith.constant 0 : index
    %50 = vector.load %arg4[%c0_21, %c0_22, %c0_23] : memref<1x8x128xf32, #tpu.memory_space<vmem>>, vector<1x8x128xf32>
    %51 = vector.shape_cast %50 : vector<1x8x128xf32> to vector<8x128xf32>
    %52 = vector.shape_cast %49 : vector<8x128xf32> to vector<1x8x128xf32>
    tpu.vector_store %arg4[%c0_21, %c0_22, %c0_23], %52 {strides = array<i32>} : memref<1x8x128xf32, #tpu.memory_space<vmem>>, vector<1x8x128xf32>,
    %c0_24 = arith.constant 0 : index
    %c0_25 = arith.constant 0 : index
    %c0_26 = arith.constant 0 : index
    %53 = vector.load %arg5[%c0_24, %c0_25, %c0_26] : memref<1x8x128xf32, #tpu.memory_space<vmem>>, vector<1x8x128xf32>
    %54 = vector.shape_cast %53 : vector<1x8x128xf32> to vector<8x128xf32>
    %55 = arith.mulf %49, %54 : vector<8x128xf32>
    %56 = vector.shape_cast %55 : vector<8x128xf32> to vector<1x8x128xf32>
    %cst_27 = arith.constant dense<0.000000e+00> : vector<1xf32>
    %57 = vector.multi_reduction <add>, %56, %cst_27 [1, 2] : vector<1x8x128xf32> to vector<1xf32>
    %58 = vector.shape_cast %57 : vector<1xf32> to vector<1x1x1xf32>
    %59 = vector.extract %58[0, 0, 0] : f32 from vector<1x1x1xf32>
    %60 = vector.broadcast %59 : f32 to vector<1x1xf32>
    %c0_28 = arith.constant 0 : index
    %c0_29 = arith.constant 0 : index
    %c0_30 = arith.constant 0 : index
    %61 = vector.load %arg3[%c0_28, %c0_29, %c0_30] : memref<1x1x1xf32, #tpu.memory_space<vmem>>, vector<1x1x1xf32>
    %62 = vector.shape_cast %61 : vector<1x1x1xf32> to vector<1x1xf32>
    %63 = vector.shape_cast %60 : vector<1x1xf32> to vector<1x1x1xf32>
    tpu.vector_store %arg3[%c0_28, %c0_29, %c0_30], %63 {strides = array<i32>} : memref<1x1x1xf32, #tpu.memory_space<vmem>>, vector<1x1x1xf32>,
    return
  }
  func.func @transform_0(%arg0: i32) -> (i32, i32, i32) {
    %c0_i32 = arith.constant 0 : i32
    %c0_i32_0 = arith.constant 0 : i32
    %c0_i32_1 = arith.constant 0 : i32
    return %arg0, %c0_i32, %c0_i32_0 : i32, i32, i32
  }
  func.func @transform_1(%arg0: i32) -> (i32, i32, i32) {
    %c0_i32 = arith.constant 0 : i32
    %c0_i32_0 = arith.constant 0 : i32
    %c0_i32_1 = arith.constant 0 : i32
    return %arg0, %c0_i32, %c0_i32_0 : i32, i32, i32
  }
  func.func @transform_2(%arg0: i32) -> (i32, i32, i32) {
    %c0_i32 = arith.constant 0 : i32
    %c0_i32_0 = arith.constant 0 : i32
    %c0_i32_1 = arith.constant 0 : i32
    return %arg0, %c0_i32, %c0_i32_0 : i32, i32, i32
  }
  func.func @transform_3(%arg0: i32) -> (i32, i32, i32) {
    %c0_i32 = arith.constant 0 : i32
    %c0_i32_0 = arith.constant 0 : i32
    %c0_i32_1 = arith.constant 0 : i32
    return %arg0, %c0_i32, %c0_i32_0 : i32, i32, i32
  }
  func.func @transform_4(%arg0: i32) -> (i32, i32, i32) {
    %c0_i32 = arith.constant 0 : i32
    %c0_i32_0 = arith.constant 0 : i32
    %c0_i32_1 = arith.constant 0 : i32
    return %arg0, %c0_i32, %c0_i32_0 : i32, i32, i32
  }
}

</mosaic_0001>

<bundles_post_ra>
// kernel: tpu_custom_call.1
= control target key start
LH: loop header
LB: loop body
LE: loop exit
PB: predicated region body
PF: predicated region fallthrough
CT: control target
= control target key end

     0   :  { %10 = vsyncpa [#allocation3], 0  ;;  %s1046_s0 = inlined_call_operand.vmem [shape: f32[2,8,3], index: 0, kind: input, shape index: {}]   ;;  %s1047_s1 = inlined_call_operand.vmem [shape: f32[2,3,128], index: 1, kind: input, shape index: {}]   ;;  %s1048_s2 = inlined_call_operand.vmem [shape: f32[2,1,1], index: 2, kind: output, shape index: {0}]   ;;  %s1049_s3 = inlined_call_operand.hbm [shape: f32[2,8,128], index: 3, kind: output, shape index: {1}]   ;;  %s1050_s4 = inlined_call_operand.hbm [shape: f32[2,8,128], index: 4, kind: output, shape index: {2}]  }
   0x1   :  { %12 = vsyncpa [#allocation3 + $0x1], 0 }
   0x2   :  { %13 = vsyncpa [#allocation5], 0 }
   0x3   :  { %15 = vsyncpa [#allocation5 + $0x1], 0  ;;  %s849_s15 = smov 0   ;;  %s851_s16 = smov 0  }
   0x4   :  { %s853_s17 = smov 0   ;;  %s855_s18 = smov 0  }
   0x5 LB: > { %s870_s19 = sadd.s32 4294967295, %s796_s18   ;;  %s555_s20 = sadd.s32 4294967294, %s796_s18   ;;  %s796_s18 = sphi %s855_s18, %s1058_s18   ;;  %s792_s17 = sphi %s853_s17, %s1057_s17   ;;  %s788_s16 = sphi %s851_s16, %s1056_s16   ;;  %s784_s15 = sphi %s849_s15, %s1055_s15  }
   0x6   : > { %s874_s21 = sadd.s32 1, %s796_s18   ;;  %s106_s22 = sadd.s32 1, %s792_s17 }
   0x7   : > { %s103_s23 = ssub.s32 %s796_s18, %s874_s21  ;;  %p116_p0 = scmp.ne.s32.totalorder %s792_s17, %s788_s16 }
   0x8   : > { %p104_p1 = scmp.eq.s32.totalorder %s103_s23, 0  ;;  %p117_p2 = scmp.eq.s32.totalorder %s870_s19, 1 }
   0x9   : > { %p122_p3 = scmp.ne.s32.totalorder %s788_s16, %s784_s15  ;;  %p123_p4 = scmp.eq.s32.totalorder %s555_s20, 1 }
   0xa   : > { %s885_s24 = scalar_select %p104_p1, %s792_s17, %s106_s22  }
   0xb   : > { %p887_p5 = por %p117_p2, %p116_p0  ;;  %p891_p6 = por %p123_p4, %p122_p3 }
   0xc   : > { %p558_p7 = scmp.ge.s32.totalorder %s796_s18, 1  ;;  %p181_p8 = scmp.lt.s32.totalorder %s796_s18, 3 }
   0xe   : > { %p182_p9 = pnand %p558_p7, %p181_p8 }
   0xf   : > { %p218_p10 = scmp.lt.s32.totalorder (!%p182_p9), %s870_s19, 1  ;;  %v236_v0 = vlaneseq (!%p182_p9)  ;;  %v818_v1 = vmov (!%p182_p9), 0   ;;  %v819_v2 = vmov (!%p182_p9), 2   ;;  %v820_v4 = vmov (!%p182_p9), -1e+30   ;;  %s915_s9 = sand.u32 (!%p182_p9), 1, %s788_s16  }
  0x10   : > { %185 = sbr.rel (%p182_p9) target bundleno = 930 (0x3a2), region = 28  ;;  %668 = vset.pattern.permute.xlu0 (!%p182_p9), %v818_v1  ;;  %670 = vset.pattern.permute.xlu1 (!%p182_p9), %v819_v2  ;;  %v821_v7 = vmov (!%p182_p9), 1   ;;  %s559_s10 = sshll.u32 (!%p182_p9), %s915_s9, 3  ;;  %v933_v28 = vmov (!%p182_p9), 0.0  }
  0x11   : > { %v901_v3 = vand.u32 (!%p182_p9), 127, %v236_v0  ;;  %v237_v8 = vshrl.u32 (!%p182_p9), %v236_v0, 7  ;;  %s922_s20 = scalar_lea.vmem (!%p182_p9), [#allocation4], %s559_s10  ;;  %s927_s22 = scalar_lea.vmem (!%p182_p9), [#allocation2], %s559_s10 }
  0x12   : > { %s929_s23 = smov (!%p182_p9), inf  }
  0x13   : > { %vm272_vm0 = vcmp.lt.s32.totalorder (!%p182_p9), %v901_v3, 8  ;;  %v238_v9 = vsub.s32 (!%p182_p9), 0, %v237_v8  ;;  %v260_v10 = vsub.s32 (!%p182_p9), 2, %v237_v8  ;;  %v249_v12 = vsub.s32 (!%p182_p9), 1, %v237_v8 }
  0x14   : > { %v274_v5 = vsel (!%p182_p9), %vm272_vm0, 0.0, %v820_v4  }
  0x17   : > { %s899_s27 = scalar_select %p218_p10, %s870_s19, 1 }
  0x19   : > { %s561_s28 = sshll.u32 %s899_s27, 3  ;;  %s228_s5 = scalar_lea.vmem %s1048_s2, %s899_s27 }
  0x1a   : > { %s221_s8 = scalar_lea.vmem %s1046_s0, %s561_s28  ;;  %s562_s11 = sshll.u32 %s899_s27, 2 }
  0x1b   : > { %v229_v6 = vld [vmem:[%s221_s8] sm:$0xff]  ;;  %s225_s14 = scalar_lea.vmem %s1047_s1, %s562_s11  ;;  %s935_s28 = smov 0  }
  0x1c   : > { %233 = vperm.xlu0 %668, %v229_v6   ;;  %255 = vperm.xlu1 %670, %v229_v6   ;;  %v230_v11 = vld [vmem:[%s225_s14] sm:$0x7] }
  0x1d   : > { %v239_v13 = vrot.slane %v230_v11, %v238_v9  ;;  %v261_v15 = vrot.slane %v230_v11, %v260_v10  ;;  %v250_v17 = vrot.slane %v230_v11, %v249_v12 }
  0x20   : > { %669 = vset.pattern.permute.xlu0 %v821_v7 }
  0x21   : > { %244 = vperm.xlu0 %669, %v229_v6  }
  0x25   : > { %671 = vset.pattern.permute.xlu0 %v819_v2 }
  0x9b   : > { %v234_v14 = vpop.permute.xlu0 %233  ;;  %v256_v16 = vpop.permute.xlu1 %255 }
  0x9c   : > { %v240_v18 = vsub.f32 %v234_v14, %v239_v13  ;;  %v262_v19 = vsub.f32 %v256_v16, %v261_v15 }
  0x9e   : > { %v241_v22 = vmul.f32 %v240_v18, %v240_v18  ;;  %v263_v24 = vmul.f32 %v262_v19, %v262_v19 }
  0xa0   : > { %v245_v20 = vpop.permute.xlu0 %244 }
  0xa1   : > { %v251_v21 = vsub.f32 %v245_v20, %v250_v17 }
  0xa3   : > { %v252_v23 = vmul.f32 %v251_v21, %v251_v21 }
  0xa5   : > { %v253_v25 = vadd.f32 %v252_v23, %v241_v22 }
  0xa7   : > { %v264_v26 = vadd.f32 %v263_v24, %v253_v25 }
  0xa9   : > { %265 = vst [vmem:[%s922_s20] sm:$0xff] %v264_v26  ;;  %v925_v27 = vmul.f32 -10.0, %v264_v26 }
  0xaa LB: >> { %s325_s29 = ssub.s32 0, %s812_s28  ;;  %p324_p11 = scmp.lt.s32.totalorder %s812_s28, 0  ;;  %s812_s28 = sphi %s935_s28, %s359_s28   ;;  %v808_v28 = vphi %v933_v28, %v1054_v28   ;;  %v804_v5 = vphi %v274_v5, %v1053_v5   ;;  %s800_s23 = sphi %s929_s23, %s1064_s23  }
  0xab   : >> { %v286_v29 = vadd.f32 %v808_v28, %v925_v27  ;;  %s563_s30 = smin.u32 %s812_s28, %s325_s29  ;;  %s814_s10 = smov 0  }
  0xac   : >> { %s327_s6 = sand.u32 3, %s563_s30  }
  0xad   : >> { %v287_v30 = vadd.f32 %v804_v5, %v286_v29  ;;  %s328_s7 = ssub.s32 0, %s327_s6 }
  0xae   : >> { %s1060_s7 = smov (!%p324_p11, %s328_s7), %s327_s6 }
  0xaf   : >> { %288 = vmax.xlane.f32.xlu0 %v287_v30  ;;  %p565_p12 = scmp.lt.s32.totalorder %s1060_s7, 0  ;;  %s334_s8 = sadd.s32 4, %s1060_s7 }
  0xb1   : >> { %s1062_s8 = smov (!%p565_p12, %s334_s8), %s1060_s7 }
  0xb2   : >> { %p566_p13 = scmp.ne.s32.totalorder %s1062_s8, 3 }
  0xb3   : >> { %vm342_vm1 = vcmask (!%p566_p13), 7168  }
 0x13c   : >> { %v289_v31 = vpop.xlane.xlu0 %288 }
 0x13d   : >> { %v290_v32 = vsub.f32 %v287_v30, %v289_v31 }
 0x13f   : >> { %v291_v33 = vmul.f32 1.442695, %v290_v32 }
 0x141   : >> { %672 = vpow2.f32 %v291_v33 }
 0x14b   : >> { %v673_v34 = vpop.eup %672 }
 0x14c   : >> { %293 = vadd.xlane.f32.xlu0 %v673_v34 }
 0x1d9   : >> { %v294_v35 = vpop.xlane.xlu0 %293 }
 0x1da   : >> { %674 = vlog2.f32 %v294_v35 }
 0x1e4   : >> { %v675_v36 = vpop.eup %674 }
 0x1e5   : >> { %v296_v37 = vmul.f32 0.6931472, %v675_v36 }
 0x1e7   : >> { %v297_v38 = vadd.f32 %v296_v37, %v289_v31 }
 0x1e9   : >> { %v298_v39 = vsub.f32 -2.0794415, %v297_v38 }
 0x1eb   : >> { %v299_v40 = vadd.f32 %v808_v28, %v298_v39  }
 0x1ed   : >> { %v301_v41 = vadd.f32 %v299_v40, %v925_v27  ;;  %v340_v0 = vsub.f32 (!%p566_p13), %v299_v40, %v808_v28 }
 0x1ef   : >> { %v302_v42 = vadd.f32 %v804_v5, %v301_v41  ;;  %v341_v1 = vand.u32 (!%p566_p13), 2147483647, %v340_v0 }
 0x1f1   : >> { %v303_v43 = vrot.slane %v302_v42, 4  ;;  %v343_v2 = vsel (!%p566_p13), %vm342_vm1, %v341_v1, 0.0 }
 0x1f2   : >> { %344 = vadd.xlane.f32.xlu0 (!%p566_p13), %v343_v2 }
 0x1f3   : >> { %v304_v44 = vmax.f32 %v302_v42, %v303_v43 }
 0x1f5   : >> { %v305_v45 = vrot.slane %v304_v44, 2 }
 0x1f7   : >> { %v306_v46 = vmax.f32 %v304_v44, %v305_v45 }
 0x1f9   : >> { %v307_v47 = vrot.slane %v306_v46, 1 }
 0x1fb   : >> { %v308_v48 = vmax.f32 %v306_v46, %v307_v47 }
 0x1fd   : >> { %v309_v49 = vsub.f32 %v302_v42, %v308_v48 }
 0x1ff   : >> { %v310_v50 = vmul.f32 1.442695, %v309_v49 }
 0x201   : >> { %676 = vpow2.f32 %v310_v50 }
 0x20b   : >> { %v677_v51 = vpop.eup %676 }
 0x20c   : >> { %v312_v52 = vrot.slane %v677_v51, 4 }
 0x20e   : >> { %v313_v53 = vadd.f32 %v677_v51, %v312_v52 }
 0x210   : >> { %v314_v54 = vrot.slane %v313_v53, 2 }
 0x212   : >> { %v315_v55 = vadd.f32 %v314_v54, %v313_v53 }
 0x214   : >> { %v316_v56 = vrot.slane %v315_v55, 1 }
 0x216   : >> { %v317_v57 = vadd.f32 %v316_v56, %v315_v55 }
 0x218   : >> { %678 = vlog2.f32 %v317_v57 }
 0x222   : >> { %v679_v58 = vpop.eup %678 }
 0x223   : >> { %v319_v59 = vmul.f32 0.6931472, %v679_v58 }
 0x225   : >> { %v320_v60 = vadd.f32 %v319_v59, %v308_v48  ;;  %339 = sbr.rel (%p566_p13) target bundleno = 703 (0x2bf), region = 39 }
 0x227   : >> { %v321_v61 = vsub.f32 -2.0794415, %v320_v60 }
 0x229   : >> { %v322_v62 = vadd.f32 %v804_v5, %v321_v61 }
 0x22b   : >> { %v323_v63 = vsel %vm272_vm0, %v322_v62, -1e+30  }
 0x27f   : >> { %v345_v4 = vpop.xlane.xlu0 %344 }
 0x280   : >> { %v346_v6 = vrot.slane %v345_v4, 4 }
 0x282   : >> { %v347_v7 = vadd.f32 %v346_v6, %v345_v4 }
 0x284   : >> { %v348_v8 = vrot.slane %v347_v7, 2 }
 0x286   : >> { %v349_v9 = vadd.f32 %v348_v8, %v347_v7 }
 0x288   : >> { %v350_v5 = vrot.slane %v349_v9, 1 }
 0x28a   : >> { %v351_v10 = vadd.f32 %v350_v5, %v349_v9 }
 0x28c   : >> { %573 = vpush %v351_v10 }
 0x2bd   : >> { %s574_s11 = spop %573 }
 0x2be   : >> { %s353_s10 = smul.f32 0.1, %s574_s11  }
 0x2bf PF: >> { %s1064_s23 = smov (!%p566_p13, %s800_s23), %s816_s10  ;;  %s359_s28 = sadd.s32 1, %s812_s28   ;;  %v1053_v5 = vmov %v323_v63  ;;  %v1054_v28 = vmov %v299_v40  ;;  %s816_s10 = sphi %s814_s10, %s353_s10  }
 0x2c0   : >> { %p280_p0 = scmp.lt.s32.totalorder %s359_s28, 100  ;;  %p281_p1 = scmp.ge.f32.partialorder %s1064_s23, 1e-09 }
 0x2c2   : >> { %p282_p2 = pnand %p281_p1, %p280_p0 }
 0x2c3   : > { %v361_v11 = vadd.f32 (%p282_p2), %v323_v63, %v301_v41  ;;  %v365_v13 = vld [vmem:[%s922_s20] sm:$0xff] (%p282_p2)  ;;  %s569_s12 = sshll.u32 (%p282_p2), %s870_s19, 7  ;;  %s404_s13 = sshll.u32 (%p282_p2), %s927_s22, 4  ;;  %s405_s13 = int_to_ptr.vmem [resolvable:$true] %s404_s13 }
 0x2c4   : > { %285 = sbr.rel (!%p282_p2) target bundleno = 170 (0xaa), region = 110  ;;  %s978_s23 = scalar_lea.hbm (%p282_p2), %s1049_s3, %s569_s12 }
 0x2c5   : > { %v362_v12 = vmul.f32 (%p282_p2), 1.442695, %v361_v11  ;;  %s383_s29 = scalar_lea.sflag (%p282_p2), [#allocation3], %s915_s9  ;;  %s682_s30 = scalar_lea.vmem (%p282_p2), %s405_s13, 128 }
 0x2c6   : > { %p683_p3 = scmp.ne.s32.totalorder (%p282_p2), %s405_s13, %s682_s30  ;;  %s822_s6 = smov (%p282_p2), [#allocation2]  }
 0x2c7   : > { %680 = vpow2.f32 (%p282_p2), %v362_v12  ;;  %s686_s7 = sshll.u32 (%p282_p2), %s822_s6, 4  ;;  %s687_s7 = int_to_ptr.vmem [resolvable:$false] %s686_s7 }
 0x2c8   : > { %p684_p4 = pnand (%p282_p2), %p683_p3, %p887_p5  ;;  %s688_s8 = scalar_lea.vmem (%p282_p2), %s687_s7, 256 }
 0x2c9   : > { %p689_p8 = scmp.lt.s32.totalorder (%p282_p2), %s405_s13, %s687_s7  ;;  %p690_p9 = scmp.lt.s32.totalorder (%p282_p2), %s688_s8, %s682_s30 }
 0x2ca   : > { %p685_p7 = pneg (%p282_p2), %p684_p4 }
 0x2cb   : > { %p691_p10 = por %p690_p9, %p689_p8 }
 0x2cd   : > { %p692_p11 = pnand %p691_p10, %p685_p7 }
 0x2d1   : > { %v681_v14 = vpop.eup %680 }
 0x2d2   : > { %v366_v15 = vmul.f32 %v681_v14, %v365_v13  ;;  %364 = vst [vmem:[%s927_s22] sm:$0xff] %v681_v14 }
 0x2d4   : > { %367 = vadd.xlane.f32.xlu0 %v366_v15 }
 0x2d5   : > { %695 = shalt.err (!%p692_p11)
}
 0x2d6   : > { %s696_s22 = scalar_lea.hbm %s978_s23, 128  ;;  %s700_s14 = scalar_lea.hbm %s1049_s3, 256 }
 0x2d7   : > { %p697_p12 = scmp.ne.s32.totalorder %s978_s23, %s696_s22  ;;  %p701_p1 = scmp.lt.u32.totalorder %s978_s23, %s1049_s3 }
 0x2d8   : > { %p702_p2 = scmp.lt.u32.totalorder %s700_s14, %s696_s22  ;;  %p704_p4 = scmp.lt.u32.totalorder %s696_s22, %s978_s23 }
 0x2d9   : > { %p698_p13 = pnand %p697_p12, %p887_p5 }
 0x2da   : > { %p703_p3 = por %p702_p2, %p701_p1 }
 0x2db   : > { %p699_p0 = pneg %p698_p13 }
 0x2dc   : > { %p705_p7 = por %p704_p4, %p703_p3 }
 0x2de   : > { %p706_p8 = pnand %p705_p7, %p699_p0 }
 0x2e0   : > { %709 = shalt.err (!%p706_p8)
}
 0x2e1   : > { %579 = dma.vmem_to_hbm [thread:$0]  (%p887_p5), %s405_s13, 128, %s978_s23, %s383_s29  }
 0x2e2   : > { %s1003_s8 = scalar_lea.hbm %s1050_s4, %s569_s12  ;;  %s417_s10 = sshll.u32 %s922_s20, 4  ;;  %s418_s10 = int_to_ptr.vmem [resolvable:$true] %s417_s10 }
 0x2e3   : > { %s388_s22 = scalar_lea.sflag [#allocation5], %s915_s9  ;;  %s710_s11 = scalar_lea.vmem %s418_s10, 128 }
 0x2e4   : > { %p711_p9 = scmp.ne.s32.totalorder %s418_s10, %s710_s11  ;;  %s823_s14 = smov [#allocation4]  }
 0x2e5   : > { %s714_s28 = sshll.u32 %s823_s14, 4  ;;  %s715_s28 = int_to_ptr.vmem [resolvable:$false] %s714_s28 }
 0x2e6   : > { %p712_p10 = pnand %p711_p9, %p887_p5  ;;  %s716_s6 = scalar_lea.vmem %s715_s28, 256 }
 0x2e7   : > { %p717_p12 = scmp.lt.s32.totalorder %s418_s10, %s715_s28  ;;  %p718_p13 = scmp.lt.s32.totalorder %s716_s6, %s710_s11 }
 0x2e8   : > { %p713_p11 = pneg %p712_p10 }
 0x2e9   : > { %p719_p0 = por %p718_p13, %p717_p12 }
 0x2eb   : > { %p720_p1 = pnand %p719_p0, %p713_p11 }
 0x2ed   : > { %723 = shalt.err (!%p720_p1)
}
 0x2ee   : > { %s724_s19 = scalar_lea.hbm %s1003_s8, 128  ;;  %s728_s12 = scalar_lea.hbm %s1050_s4, 256 }
 0x2ef   : > { %p725_p2 = scmp.ne.s32.totalorder %s1003_s8, %s724_s19  ;;  %p729_p7 = scmp.lt.u32.totalorder %s1003_s8, %s1050_s4 }
 0x2f0   : > { %p730_p8 = scmp.lt.u32.totalorder %s728_s12, %s724_s19  ;;  %p732_p10 = scmp.lt.u32.totalorder %s724_s19, %s1003_s8 }
 0x2f1   : > { %p726_p3 = pnand %p725_p2, %p887_p5 }
 0x2f2   : > { %p731_p9 = por %p730_p8, %p729_p7 }
 0x2f3   : > { %p727_p4 = pneg %p726_p3 }
 0x2f4   : > { %p733_p11 = por %p732_p10, %p731_p9 }
 0x2f6   : > { %p734_p12 = pnand %p733_p11, %p727_p4 }
 0x2f8   : > { %737 = shalt.err (!%p734_p12)
}
 0x2f9   : > { %580 = dma.vmem_to_hbm [thread:$0]  (%p887_p5), %s418_s10, 128, %s1003_s8, %s388_s22   ;;  %vm377_vm2 = vcmask 0  }
 0x361   : > { %v368_v3 = vpop.xlane.xlu0 %367 }
 0x362   : > { %v369_v16 = vrot.slane %v368_v3, 4 }
 0x364   : > { %v370_v17 = vadd.f32 %v369_v16, %v368_v3 }
 0x366   : > { %v371_v18 = vrot.slane %v370_v17, 2 }
 0x368   : > { %v372_v19 = vadd.f32 %v371_v18, %v370_v17 }
 0x36a   : > { %v373_v20 = vrot.slane %v372_v19, 1 }
 0x36c   : > { %v374_v21 = vadd.f32 %v373_v20, %v372_v19 }
 0x36e   : > { %575 = vpush %v374_v21 }
 0x39f   : > { %s576_s29 = spop %575 }
 0x3a0   : > { %v376_v22 = vstv %s576_s29 }
 0x3a1   : > { %378 = vst.msk [vmem:[%s228_s5] sm:$0x1] %vm377_vm2, %v376_v22 }
 0x3a2 PF: > { %p591_p5 = scmp.ge.s32.totalorder %s796_s18, 2  ;;  %s435_s25 = sand.u32 1, %s784_s15  }
 0x3a3   : > { %s436_s8 = scalar_lea.sflag [#allocation3], %s435_s25 }
 0x3a4   : > { %p584_p13 = pnand %p591_p5, %p891_p6 }
 0x3a6   : > { %775 = dma.done.wait (!%p584_p13), %s436_s8, 128  }
 0x3a7   : > { %777 = vsyncadd (!%p584_p13), %s436_s8, 4294967168  ;;  %s445_s10 = scalar_lea.sflag [#allocation5], %s435_s25 }
 0x3a8   : > { %779 = dma.done.wait (!%p584_p13), %s445_s10, 128  }
 0x3a9   : > { %781 = vsyncadd (!%p584_p13), %s445_s10, 4294967168  ;;  %p18_p0 = scmp.ge.s32.totalorder %s874_s21, 4   ;;  %s1055_s15 = smov %s788_s16 }
 0x3aa   : > { %s1056_s16 = smov %s792_s17  ;;  %s1057_s17 = smov %s885_s24 }
 0x3ab   : > { %s1058_s18 = smov %s874_s21  ;;  %20 = sbr.rel (!%p18_p0) target bundleno = 5 (0x5), region = 121 }
 0x3b2   :  { %450 = vsyncpa [#allocation3], 1 }
 0x3b3   :  { %452 = vsyncpa [#allocation3 + $0x1], 1 }
 0x3b4   :  { %453 = vsyncpa [#allocation5], 1 }
 0x3b5   :  { %455 = vsyncpa [#allocation5 + $0x1], 1 }

</bundles_post_ra>
